<compile_context>
chip_gen: v7x
topology: tpu7x:2x2x1
jax: 0.10.0
libtpu: 0.0.40
codegen_flags: <defaults>
</compile_context>

<pallas_src>
import math

import jax
import jax.numpy as jnp
from jax import lax
from jax.experimental import pallas as pl
from jax.experimental.pallas import tpu as pltpu


def attn_kernel(x_ref, wqkv_ref, bqkv_ref, o_ref):
    # x_ref   : (S, D)   one head's sequence
    # wqkv_ref: (D, 3D)  fused [Q*scale | K | V] weights
    # bqkv_ref: (1, 3D)  fused [Q*scale | K | V] biases
    # o_ref   : (S, D)
    D = o_ref.shape[-1]
    dtype = x_ref.dtype

    x = x_ref[...]

    # Single fused projection: one MXU weight push, f32 accumulation.
    qkv = (jnp.dot(x, wqkv_ref[...], preferred_element_type=jnp.float32)
           + bqkv_ref[...])                                   # (S, 3D) f32
    # For D % 128 == 0 (the stated model has D=256) these slices are
    # lane-tile aligned; for the tiny demo D=32 the copy cost is negligible.
    q = qkv[:, :D].astype(dtype)                              # scale folded in
    k = qkv[:, D:2 * D].astype(dtype)
    v = qkv[:, 2 * D:].astype(dtype)

    # q @ k^T without materializing a transpose: contract last dim of both.
    qk = lax.dot_general(q, k,
                         dimension_numbers=(((1,), (1,)), ((), ())),
                         preferred_element_type=jnp.float32)  # (S, S) f32

    # Numerically stable softmax with DEFERRED normalization: multiply the
    # un-normalized probabilities into V first, divide the (S, D) result.
    m = jnp.max(qk, axis=-1, keepdims=True)
    p = jnp.exp(qk - m)                                       # (S, S) f32
    denom = jnp.sum(p, axis=-1, keepdims=True)                # (S, 1) f32

    # dropout_p = 0.0 -> identity
    out_un = jnp.dot(p.astype(dtype), v,
                     preferred_element_type=jnp.float32)      # (S, D) f32
    o_ref[...] = (out_un / denom).astype(o_ref.dtype)         # exact divide


def sdpa_attention(x, wq, bq, wk, bk, wv, bv):
    """x: [B, H, S, D]; weights: [D, D]; biases: [1, D]."""
    B, H, S, D = x.shape
    scale = 1.0 / math.sqrt(D)

    # Host-side prep: fold the softmax scale into the Q projection, fuse Q/K/V
    # into a single (D, 3D) weight / (1, 3D) bias.
    wqkv = jnp.concatenate([wq * scale, wk, wv], axis=1).astype(x.dtype)
    bqkv = jnp.concatenate([bq * scale, bk, bv], axis=1).astype(x.dtype)

    # Flatten (B, H) into one flat grid axis: full sequence per head, so K/V
    # are computed exactly once per head and x is streamed from HBM once.
    xf = x.reshape(B * H, S, D)

    x_spec = pl.BlockSpec((None, S, D), lambda bh: (bh, 0, 0))
    wqkv_spec = pl.BlockSpec((D, 3 * D), lambda bh: (0, 0))
    bqkv_spec = pl.BlockSpec((1, 3 * D), lambda bh: (0, 0))
    o_spec = pl.BlockSpec((None, S, D), lambda bh: (bh, 0, 0))

    itemsize = jnp.dtype(x.dtype).itemsize
    cost = pl.CostEstimate(
        flops=int(B * H * (6 * S * D * D + 4 * S * S * D)),
        transcendentals=int(B * H * S * S),
        bytes_accessed=int(2 * xf.size * itemsize
                           + wqkv.size * itemsize + bqkv.size * itemsize),
    )

    out_flat = pl.pallas_call(
        attn_kernel,
        out_shape=jax.ShapeDtypeStruct((B * H, S, D), x.dtype),
        grid_spec=pltpu.PrefetchScalarGridSpec(
            num_scalar_prefetch=0,
            grid=(B * H,),
            in_specs=[x_spec, wqkv_spec, bqkv_spec],
            out_specs=o_spec,
        ),
        compiler_params=pltpu.CompilerParams(
            dimension_semantics=("parallel",)),
        cost_estimate=cost,
    )(xf, wqkv, bqkv)

    return out_flat.reshape(B, H, S, D)


def reference(x, wq, bq, wk, bk, wv, bv):
    scale = 1.0 / math.sqrt(x.shape[-1])
    q = x @ wq + bq
    k = x @ wk + bk
    v = x @ wv + bv
    qk = jnp.einsum("bhqd,bhkd->bhqk", q, k) * scale
    attn = jax.nn.softmax(qk, axis=-1)
    return jnp.einsum("bhqk,bhkd->bhqd", attn, v)


if __name__ == "__main__":
    # Small shapes consistent with the (1, 4, 256, 256) attention input:
    # batch=2, heads=4, seq=8, head_dim=32.
    B, H, S, D = 2, 4, 8, 32
    key = jax.random.PRNGKey(0)
    kx, kq, kk, kv, kbq, kbk, kbv = jax.random.split(key, 7)

    x = jax.random.normal(kx, (B, H, S, D), dtype=jnp.float32)
    wq = jax.random.normal(kq, (D, D), dtype=jnp.float32) * 0.1
    wk = jax.random.normal(kk, (D, D), dtype=jnp.float32) * 0.1
    wv = jax.random.normal(kv, (D, D), dtype=jnp.float32) * 0.1
    bq = jax.random.normal(kbq, (1, D), dtype=jnp.float32) * 0.1
    bk = jax.random.normal(kbk, (1, D), dtype=jnp.float32) * 0.1
    bv = jax.random.normal(kbv, (1, D), dtype=jnp.float32) * 0.1

    out = sdpa_attention(x, wq, bq, wk, bk, wv, bv)
    out = jax.block_until_ready(out)

    ref = reference(x, wq, bq, wk, bk, wv, bv)
    assert out.shape == (B, H, S, D)
    assert jnp.allclose(out, ref, atol=1e-3, rtol=1e-3), "mismatch vs reference"

    print("KERNEL_OK")
</pallas_src>

<mosaic_0001>
module attributes {stable_mosaic.version = 11 : i64} {
  func.func @attn_kernel(%arg0: i32, %arg1: memref<1x8x32xf32, #tpu.memory_space<vmem>>, %arg2: memref<32x96xf32, #tpu.memory_space<vmem>>, %arg3: memref<1x96xf32, #tpu.memory_space<vmem>>, %arg4: memref<1x8x32xf32, #tpu.memory_space<vmem>>) attributes {dimension_semantics = [#tpu.dimension_semantics<parallel>], iteration_bounds = array<i64: 8>, scalar_prefetch = 0 : i64, scratch_operands = 0 : i64, tpu.core_type = #tpu.core_type<tc>, window_params = [{transform_indices = @transform_0, window_bounds = array<i64: 1, 8, 32>}, {pipeline_mode = #tpu.pipeline_mode<synchronous>, transform_indices = @transform_1, window_bounds = array<i64: 32, 96>}, {pipeline_mode = #tpu.pipeline_mode<synchronous>, transform_indices = @transform_2, window_bounds = array<i64: 1, 96>}, {transform_indices = @transform_3, window_bounds = array<i64: 1, 8, 32>}]} {
    %c0 = arith.constant 0 : index
    %c0_0 = arith.constant 0 : index
    %c0_1 = arith.constant 0 : index
    %0 = vector.load %arg1[%c0, %c0_0, %c0_1] : memref<1x8x32xf32, #tpu.memory_space<vmem>>, vector<1x8x32xf32>
    %1 = vector.shape_cast %0 : vector<1x8x32xf32> to vector<8x32xf32>
    %c0_2 = arith.constant 0 : index
    %c0_3 = arith.constant 0 : index
    %2 = vector.load %arg2[%c0_2, %c0_3] : memref<32x96xf32, #tpu.memory_space<vmem>>, vector<32x96xf32>
    %cst = arith.constant dense<0.000000e+00> : vector<8x96xf32>
    %3 = tpu.matmul %1, %2, %cst {dimension_numbers = #tpu.dot_dimension_numbers<[1], [0], [0], [1], [0, 0, 1, 1], [], []>} : vector<8x32xf32>, vector<32x96xf32>, vector<8x96xf32> -> vector<8x96xf32>
    %c0_4 = arith.constant 0 : index
    %c0_5 = arith.constant 0 : index
    %4 = vector.load %arg3[%c0_4, %c0_5] : memref<1x96xf32, #tpu.memory_space<vmem>>, vector<1x96xf32>
    %5 = vector.broadcast %4 : vector<1x96xf32> to vector<8x96xf32>
    %6 = arith.addf %3, %5 : vector<8x96xf32>
    %7 = vector.extract_strided_slice %6 {offsets = [0, 0], sizes = [8, 32], strides = [1, 1]} : vector<8x96xf32> to vector<8x32xf32>
    %8 = vector.extract_strided_slice %6 {offsets = [0, 32], sizes = [8, 32], strides = [1, 1]} : vector<8x96xf32> to vector<8x32xf32>
    %9 = vector.extract_strided_slice %6 {offsets = [0, 64], sizes = [8, 32], strides = [1, 1]} : vector<8x96xf32> to vector<8x32xf32>
    %cst_6 = arith.constant dense<0.000000e+00> : vector<8x8xf32>
    %10 = tpu.matmul %7, %8, %cst_6 {dimension_numbers = #tpu.dot_dimension_numbers<[1], [1], [0], [0], [0, 0, 1, 0], [], []>} : vector<8x32xf32>, vector<8x32xf32>, vector<8x8xf32> -> vector<8x8xf32>
    %cst_7 = arith.constant dense<0xFF800000> : vector<8xf32>
    %11 = vector.multi_reduction <maximumf>, %10, %cst_7 [1] : vector<8x8xf32> to vector<8xf32>
    %12 = vector.shape_cast %11 : vector<8xf32> to vector<8x1xf32>
    %13 = vector.broadcast %12 : vector<8x1xf32> to vector<8x8xf32>
    %14 = arith.subf %10, %13 : vector<8x8xf32>
    %15 = math.exp %14 : vector<8x8xf32>
    %cst_8 = arith.constant dense<0.000000e+00> : vector<8xf32>
    %16 = vector.multi_reduction <add>, %15, %cst_8 [1] : vector<8x8xf32> to vector<8xf32>
    %17 = vector.shape_cast %16 : vector<8xf32> to vector<8x1xf32>
    %cst_9 = arith.constant dense<0.000000e+00> : vector<8x32xf32>
    %18 = tpu.matmul %15, %9, %cst_9 {dimension_numbers = #tpu.dot_dimension_numbers<[1], [0], [0], [1], [0, 0, 1, 1], [], []>} : vector<8x8xf32>, vector<8x32xf32>, vector<8x32xf32> -> vector<8x32xf32>
    %19 = vector.broadcast %17 : vector<8x1xf32> to vector<8x32xf32>
    %20 = arith.divf %18, %19 : vector<8x32xf32>
    %c0_10 = arith.constant 0 : index
    %c0_11 = arith.constant 0 : index
    %c0_12 = arith.constant 0 : index
    %21 = vector.load %arg4[%c0_10, %c0_11, %c0_12] : memref<1x8x32xf32, #tpu.memory_space<vmem>>, vector<1x8x32xf32>
    %22 = vector.shape_cast %21 : vector<1x8x32xf32> to vector<8x32xf32>
    %23 = vector.shape_cast %20 : vector<8x32xf32> to vector<1x8x32xf32>
    tpu.vector_store %arg4[%c0_10, %c0_11, %c0_12], %23 {strides = array<i32>} : memref<1x8x32xf32, #tpu.memory_space<vmem>>, vector<1x8x32xf32>,
    return
  }
  func.func @transform_0(%arg0: i32) -> (i32, i32, i32) {
    %c0_i32 = arith.constant 0 : i32
    %c0_i32_0 = arith.constant 0 : i32
    %c0_i32_1 = arith.constant 0 : i32
    return %arg0, %c0_i32, %c0_i32_0 : i32, i32, i32
  }
  func.func @transform_1(%arg0: i32) -> (i32, i32) {
    %c0_i32 = arith.constant 0 : i32
    %c0_i32_0 = arith.constant 0 : i32
    %c0_i32_1 = arith.constant 0 : i32
    return %c0_i32, %c0_i32_0 : i32, i32
  }
  func.func @transform_2(%arg0: i32) -> (i32, i32) {
    %c0_i32 = arith.constant 0 : i32
    %c0_i32_0 = arith.constant 0 : i32
    %c0_i32_1 = arith.constant 0 : i32
    return %c0_i32, %c0_i32_0 : i32, i32
  }
  func.func @transform_3(%arg0: i32) -> (i32, i32, i32) {
    %c0_i32 = arith.constant 0 : i32
    %c0_i32_0 = arith.constant 0 : i32
    %c0_i32_1 = arith.constant 0 : i32
    return %arg0, %c0_i32, %c0_i32_0 : i32, i32, i32
  }
}

</mosaic_0001>

<bundles_post_ra>
// kernel: tpu_custom_call.1
= control target key start
LH: loop header
LB: loop body
LE: loop exit
PB: predicated region body
PF: predicated region fallthrough
CT: control target
= control target key end

     0   :  { %8 = vsyncpa [#allocation3], 0  ;;  %s1031_s0 = inlined_call_operand.hbm [shape: f32[8,8,32], index: 0, kind: input, shape index: {}]   ;;  %s1032_s1 = inlined_call_operand.hbm [shape: f32[32,96], index: 1, kind: input, shape index: {}]   ;;  %s1033_s2 = inlined_call_operand.vmem [shape: f32[1,96], index: 2, kind: input, shape index: {}]   ;;  %s1034_s3 = inlined_call_operand.hbm [shape: f32[8,8,32], index: 3, kind: output, shape index: {}]  }
   0x1   :  { %10 = vsyncpa [#allocation3 + $0x1], 0 }
   0x2   :  { %11 = vsyncpa [#allocation6], 0 }
   0x3   :  { %12 = vsyncpa [#allocation4], 0 }
   0x4   :  { %14 = vsyncpa [#allocation4 + $0x1], 0  ;;  %s830_s12 = smov 0   ;;  %s832_s13 = smov 0  }
   0x5   :  { %s834_s14 = smov 0   ;;  %s836_s15 = smov 0  }
   0x6 LB: > { %s851_s16 = sadd.s32 4294967295, %s798_s15   ;;  %s547_s17 = sadd.s32 4294967294, %s798_s15   ;;  %s798_s15 = sphi %s836_s15, %s1053_s15   ;;  %s794_s14 = sphi %s834_s14, %s1052_s14   ;;  %s790_s13 = sphi %s832_s13, %s1051_s13   ;;  %s786_s12 = sphi %s830_s12, %s1050_s12  }
   0x7   : > { %p40_p0 = scmp.ne.s32.totalorder %s790_s13, %s786_s12  ;;  %p1035_p1 = scmp.eq.s32.totalorder %s851_s16, 0 }
   0x8   : > { %p112_p3 = scmp.eq.s32.totalorder %s547_s17, 7  ;;  %p548_p5 = scmp.ge.s32.totalorder %s798_s15, 1 }
   0x9   : > { %p860_p4 = por %p1035_p1, %p40_p0  ;;  %p119_p7 = scmp.lt.s32.totalorder %s798_s15, 9 }
   0xa   : > { %p865_p6 = por %p112_p3, %p40_p0  ;;  %s800_s21 = smov [#allocation5]  }
   0xb   : > { %s1038_s18 = scalar_select %p860_p4, 1, 0 }
   0xc   : > { %s1039_s19 = scalar_select %p865_p6, 1, 0 }
   0xd   : > { %p870_p8 = pnand %p548_p5, %p119_p7  ;;  %s131_s22 = sshll.u32 %s800_s21, 4  ;;  %s132_s22 = int_to_ptr.vmem [resolvable:$true] %s131_s22 }
   0xe   : > { %s883_s24 = sadd.s32 1, %s798_s15   ;;  %s27_s25 = sadd.s32 1, %s794_s14 }
   0xf   : > { %s1040_s20 = scalar_select %p870_p8, 1, 0 }
  0x10   : > { %p610_p9 = pneg %p870_p8  ;;  %s24_s26 = ssub.s32 %s798_s15, %s883_s24 }
  0x11   : > { %s670_s29 = scalar_lea.hbm %s1032_s1, 512 }
  0x12   : > { %p878_p10 = pnand %p610_p9, %p1035_p1  ;;  %p671_p11 = scmp.ne.s32.totalorder %s1032_s1, %s670_s29 }
  0x13   : > { %p677_p3 = scmp.lt.u32.totalorder %s670_s29, %s1032_s1 }
  0x14   : > { %p672_p12 = pneg %p878_p10 }
  0x16   : > { %p673_p13 = pnand %p672_p12, %p671_p11 }
  0x18   : > { %p674_p0 = pneg %p673_p13 }
  0x1a   : > { %p679_p5 = pnand %p677_p3, %p674_p0 }
  0x1c   : > { %682 = shalt.err (!%p679_p5)
}
  0x1d   : > { %s683_s7 = scalar_lea.vmem %s132_s22, 512  ;;  %p691_p2 = scmp.lt.s32.totalorder %s132_s22, %s132_s22 }
  0x1e   : > { %p684_p7 = scmp.ne.s32.totalorder %s132_s22, %s683_s7  ;;  %p692_p6 = scmp.lt.s32.totalorder %s683_s7, %s683_s7 }
  0x20   : > { %p686_p9 = pnand %p684_p7, %p672_p12  ;;  %p693_p4 = por %p692_p6, %p691_p2 }
  0x22   : > { %p687_p1 = pneg %p686_p9 }
  0x24   : > { %p694_p8 = pnand %p693_p4, %p687_p1 }
  0x26   : > { %697 = shalt.err (!%p694_p8)
}
  0x27   : > { %s801_s8 = smov 128   ;;  %s802_s9 = smov 8  }
  0x28   : > { %613 = dma.hbm_to_vmem [thread:$0]  (!%p878_p10), %s1032_s1, 512, %s132_s22, [#allocation6], %s801_s8, %s801_s8, %s802_s9  }
  0x29   : > { %p25_p11 = scmp.eq.s32.totalorder %s24_s26, 0  ;;  %p34_p2 = scmp.ne.s32.totalorder %s794_s14, %s790_s13 }
  0x2a   : > { %p35_p1 = scmp.eq.s32.totalorder %s798_s15, 0  ;;  %p623_p4 = scmp.lt.s32.totalorder %s798_s15, 8 }
  0x2b   : > { %s909_s17 = scalar_select %p25_p11, %s794_s14, %s27_s25  }
  0x2c   : > { %p36_p6 = por %p35_p1, %p34_p2  ;;  %p1042_p8 = scmp.eq.s32.totalorder %s851_s16, 7 }
  0x2d   : > { %s148_s27 = sand.u32 1, %s794_s14   ;;  %s552_s28 = sshll.u32 %s798_s15, 7 }
  0x2e   : > { %p913_p12 = por %p1042_p8, %p34_p2  ;;  %s551_s29 = sshll.u32 %s148_s27, 3 }
  0x2f   : > { %s922_s4 = scalar_lea.hbm %s1031_s0, %s552_s28  ;;  %s152_s22 = scalar_lea.vmem [#allocation2], %s551_s29 }
  0x30   : > { %s159_s25 = sshll.u32 %s152_s22, 4  ;;  %p924_p10 = pnand %p623_p4, %p36_p6  ;;  %s928_s25 = int_to_ptr.vmem [resolvable:$true] %s159_s25 }
  0x31   : > { %s149_s5 = scalar_lea.sflag [#allocation3], %s148_s27  ;;  %s698_s6 = scalar_lea.hbm %s922_s4, 128 }
  0x32   : > { %p699_p13 = scmp.ne.s32.totalorder %s922_s4, %s698_s6  ;;  %p700_p0 = pneg %p924_p10 }
  0x33   : > { %s703_s9 = scalar_lea.hbm %s1031_s0, 1024  ;;  %p704_p7 = scmp.lt.u32.totalorder %s922_s4, %s1031_s0 }
  0x34   : > { %p701_p3 = pnand %p700_p0, %p699_p13  ;;  %p705_p9 = scmp.lt.u32.totalorder %s703_s9, %s698_s6 }
  0x35   : > { %p707_p2 = scmp.lt.u32.totalorder %s698_s6, %s922_s4 }
  0x36   : > { %p702_p5 = pneg %p701_p3  ;;  %p706_p11 = por %p705_p9, %p704_p7 }
  0x38   : > { %p708_p1 = por %p707_p2, %p706_p11 }
  0x3a   : > { %p709_p4 = pnand %p708_p1, %p702_p5 }
  0x3c   : > { %712 = shalt.err (!%p709_p4)
}
  0x3d   : > { %s713_s27 = scalar_lea.vmem %s928_s25, 128  ;;  %s803_s28 = smov [#allocation2]  }
  0x3e   : > { %p714_p6 = scmp.ne.s32.totalorder %s928_s25, %s713_s27  ;;  %s718_s29 = sshll.u32 %s803_s28, 4  ;;  %s719_s29 = int_to_ptr.vmem [resolvable:$false] %s718_s29 }
  0x3f   : > { %s720_s23 = scalar_lea.vmem %s719_s29, 256  ;;  %p721_p3 = scmp.lt.s32.totalorder %s928_s25, %s719_s29 }
  0x40   : > { %p716_p8 = pnand %p714_p6, %p700_p0  ;;  %p722_p7 = scmp.lt.s32.totalorder %s720_s23, %s713_s27 }
  0x42   : > { %p717_p13 = pneg %p716_p8  ;;  %p723_p9 = por %p722_p7, %p721_p3 }
  0x44   : > { %p724_p11 = pnand %p723_p9, %p717_p13 }
  0x46   : > { %727 = shalt.err (!%p724_p11)
}
  0x47   : > { %617 = dma.hbm_to_vmem [thread:$0]  (!%p924_p10), %s922_s4, 128, %s928_s25, %s149_s5  }
  0x48   : > { %p1045_p5 = scmp.ne.s32.totalorder %s1040_s20, 0 }
  0x49   : > { %s958_s30 = sand.u32 (!%p1045_p5), 1, %s790_s13   ;;  %p1046_p0 = scmp.ne.s32.totalorder (!%p1045_p5), %s1038_s18, 0 }
  0x4a   : > { %168 = sbr.rel (%p1045_p5) target bundleno = 1025 (0x401), region = 32  ;;  %s554_s22 = sshll.u32 (!%p1045_p5), %s958_s30, 3 }
  0x4b   : > { %s171_s6 = scalar_lea.sflag (!%p1045_p5), [#allocation3], %s958_s30  ;;  %s174_s7 = scalar_lea.vmem (!%p1045_p5), [#allocation2], %s554_s22 }
  0x51   : > { %773 = dma.done.wait (%p1046_p0), %s171_s6, 128  }
  0x52   : > { %775 = vsyncadd (%p1046_p0), %s171_s6, 4294967168  ;;  %p1047_p10 = scmp.eq.s32.totalorder %s851_s16, 0 }
  0x54   : > { %777 = dma.done.wait (%p1047_p10), [#allocation6], 512   ;;  %p1048_p2 = pmov %p1047_p10 }
  0x55   : > { %v804_v0 = vmov 0.0|0.0   ;;  %vm805_vm0 = vmmov 0   ;;  %v806_v1 = vmov 0.0   ;;  %v202_v2 = vld [vmem:[#allocation5] sm:$0xff]  ;;  %v203_v3 = vld [vmem:[#allocation5 + $0x8] sm:$0xff]  ;;  %v204_v4 = vld [vmem:[#allocation5 + $0x10] sm:$0xff] }
  0x56   : > { %779 = vsyncadd (%p1048_p2), [#allocation6], 4294966784  ;;  %596 = vmatprep.subr.bf16.mxu0 %v804_v0  ;;  %583 = vmatprep.mubr.msk.f32.mxu0 %vm805_vm0, %v806_v1  ;;  %v597_v5 = vpack.c.bf16 %v203_v3, %v202_v2  ;;  %v205_v6 = vld [vmem:[#allocation5 + $0x18] sm:$0xff]  ;;  %vm213_vm1 = vcmask 261120   ;;  %v557_v9 = vld [vmem:[%s1033_s2] ss:$0 sm:$0xff] }
  0x57   : > { %586 = vmatprep.subr.mxu1 %v806_v1  ;;  %588 = vmatprep.mubr.msk.f32.mxu1 %vm805_vm0, %v806_v1  ;;  %v600_v7 = vpack.c.bf16 %v205_v6, %v204_v4  ;;  %v201_v8 = vld [vmem:[%s174_s7] sm:$0xff]  ;;  %s807_s4 = smov 64   ;;  %s808_s25 = smov 96   ;;  %vm364_vm2 = vcmask 64512  }
  0x58   : > { %598 = vmatpush3.bf16.msra.mxu0 %v597_v5  ;;  %s563_s26 = sshll.u32 %s851_s16, 7  ;;  %s200_s5 = scalar_lea.vmem [#allocation7], %s554_s22 }
  0x59   : > { %599 = vmatprep.subr.bf16.mxu0 %v804_v0  ;;  %s467_s8 = sshll.u32 %s200_s5, 4  ;;  %s987_s11 = scalar_lea.hbm %s1034_s3, %s563_s26  ;;  %s989_s8 = int_to_ptr.vmem [resolvable:$true] %s467_s8 }
  0x5a   : > { %s454_s16 = scalar_lea.sflag [#allocation4], %s958_s30  ;;  %s728_s27 = scalar_lea.vmem %s989_s8, 128 }
  0x5b   : > { %p729_p1 = scmp.ne.s32.totalorder %s989_s8, %s728_s27  ;;  %s809_s28 = smov [#allocation7]  }
  0x5c   : > { %601 = vmatpush3.bf16.msra.mxu0 %v600_v7  ;;  %s732_s29 = sshll.u32 %s809_s28, 4  ;;  %s733_s29 = int_to_ptr.vmem [resolvable:$false] %s732_s29 }
  0x5d   : > { %p730_p4 = pnand %p729_p1, %p913_p12  ;;  %s734_s23 = scalar_lea.vmem %s733_s29, 256 }
  0x5e   : > { %p735_p8 = scmp.lt.s32.totalorder %s989_s8, %s733_s29  ;;  %p736_p13 = scmp.lt.s32.totalorder %s734_s23, %s728_s27 }
  0x5f   : > { %584 = vmatmul.mubr.msk.f32.vlgmr.msra.gmra.mrb[0].mxu0 %vm213_vm1, %v201_v8  ;;  %p731_p6 = pneg %p730_p4 }
  0x60   : > { %p737_p3 = por %p736_p13, %p735_p8 }
  0x62   : > { %p738_p7 = pnand %p737_p3, %p731_p6 }
 0x132   : > { %v283_v10 = vpop.f32.mrb[0].mxu0 }
 0x133   : > { %v284_v11 = vadd.f32 %v557_v9, %v283_v10  ;;  %v585_v12 = vpop.f32.mrb[1].mxu0 }
 0x135   : > { %374 = vrot.lane.b32.xlu1 %v284_v11, %s807_s4  ;;  %288 = vrot.lane.b32.xlu0 %v284_v11, %s808_s25 }
 0x1a7   : > { %v289_v13 = vpop.permute.xlu0 %288  ;;  %v375_v14 = vpop.permute.xlu1 %374 }
 0x1a8   : > { %587 = vmatpush3.xpose.msk.msra.mxu1 %vm213_vm1, %v289_v13 }
 0x1a9   : > { %591 = vmatprep.subr.mxu1 %v806_v1 }
 0x1ab   : > { %589 = vmatmul.mubr.msk.f32.vlgmr.msra.gmra.mrb[0].mxu1 %vm213_vm1, %v284_v11 }
 0x1ac   : > { %592 = vmatpush3.msra.mxu1 %v375_v14  ;;  %593 = vmatprep.mubr.msk.f32.mxu1 %vm805_vm0, %v806_v1 }
 0x27e   : > { %v360_v15 = vpop.f32.mrb[0].mxu1 }
 0x27f   : > { %v590_v16 = vpop.f32.mrb[1].mxu1  ;;  %v365_v17 = vsel %vm364_vm2, %v360_v15, -inf }
 0x280   : > { %366 = vmax.xlane.f32.xlu0 %v365_v17 }
 0x30d   : > { %v367_v18 = vpop.xlane.xlu0 %366 }
 0x30e   : > { %v368_v19 = vsub.f32 %v360_v15, %v367_v18 }
 0x310   : > { %v369_v20 = vmul.f32 1.442695, %v368_v19 }
 0x312   : > { %666 = vpow2.f32 %v369_v20 }
 0x31c   : > { %v667_v21 = vpop.eup %666 }
 0x31d   : > { %594 = vmatmul.mubr.msk.f32.vlgmr.msra.gmra.mrb[2].mxu1 %vm364_vm2, %v667_v21  ;;  %v371_v22 = vsel %vm364_vm2, %v667_v21, 0.0 }
 0x31e   : > { %372 = vadd.xlane.f32.xlu1 %v371_v22 }
 0x3ab   : > { %v373_v23 = vpop.xlane.xlu1 %372 }
 0x3ac   : > { %668 = vrcp.f32 %v373_v23 }
 0x3b6   : > { %v669_v24 = vpop.eup %668 }
 0x3f0   : > { %v446_v25 = vpop.f32.mrb[2].mxu1 }
 0x3f1   : > { %v451_v26 = vmul.f32 %v669_v24, %v446_v25  ;;  %v595_v27 = vpop.f32.mrb[3].mxu1 }
 0x3f3   : > { %452 = vst.msk [vmem:[%s200_s5] sm:$0xff] %vm213_vm1, %v451_v26 }
 0x3f4   : > { %741 = shalt.err (!%p738_p7)
}
 0x3f5   : > { %s742_s30 = scalar_lea.hbm %s987_s11, 128  ;;  %s746_s7 = scalar_lea.hbm %s1034_s3, 1024 }
 0x3f6   : > { %p743_p9 = scmp.ne.s32.totalorder %s987_s11, %s742_s30  ;;  %p747_p0 = scmp.lt.u32.totalorder %s987_s11, %s1034_s3 }
 0x3f7   : > { %p748_p10 = scmp.lt.u32.totalorder %s746_s7, %s742_s30  ;;  %p750_p1 = scmp.lt.u32.totalorder %s742_s30, %s987_s11 }
 0x3f8   : > { %p744_p11 = pnand %p743_p9, %p913_p12 }
 0x3f9   : > { %p749_p2 = por %p748_p10, %p747_p0 }
 0x3fa   : > { %p745_p5 = pneg %p744_p11 }
 0x3fb   : > { %p751_p4 = por %p750_p1, %p749_p2 }
 0x3fd   : > { %p752_p6 = pnand %p751_p4, %p745_p5 }
 0x3ff   : > { %755 = shalt.err (!%p752_p6)
}
 0x400   : > { %608 = dma.vmem_to_hbm [thread:$0]  (%p913_p12), %s989_s8, 128, %s987_s11, %s454_s16  }
 0x401 PF: > { %p625_p8 = scmp.ge.s32.totalorder %s798_s15, 2  ;;  %s479_s4 = sand.u32 1, %s786_s12  }
 0x402   : > { %p1049_p13 = scmp.ne.s32.totalorder %s1039_s19, 0  ;;  %s480_s25 = scalar_lea.sflag [#allocation4], %s479_s4 }
 0x404   : > { %p619_p3 = pnand %p625_p8, %p1049_p13 }
 0x406   : > { %781 = dma.done.wait (!%p619_p3), %s480_s25, 128  }
 0x407   : > { %783 = vsyncadd (!%p619_p3), %s480_s25, 4294967168  ;;  %p17_p7 = scmp.ge.s32.totalorder %s883_s24, 10   ;;  %s1050_s12 = smov %s790_s13 }
 0x408   : > { %s1051_s13 = smov %s794_s14  ;;  %s1052_s14 = smov %s909_s17 }
 0x409   : > { %s1053_s15 = smov %s883_s24  ;;  %19 = sbr.rel (!%p17_p7) target bundleno = 6 (0x6), region = 81 }
 0x410   :  { %485 = vsyncpa [#allocation3], 1 }
 0x411   :  { %487 = vsyncpa [#allocation3 + $0x1], 1 }
 0x412   :  { %488 = vsyncpa [#allocation6], 1 }
 0x413   :  { %489 = vsyncpa [#allocation4], 1 }
 0x414   :  { %491 = vsyncpa [#allocation4 + $0x1], 1 }

</bundles_post_ra>
